<compile_context>
chip_gen: v5e
topology: v5e:2x2
jax: 0.10.0
libtpu: 0.0.40
codegen_flags: <defaults>
</compile_context>

<pallas_src>
import math
import jax
import jax.numpy as jnp
from jax.experimental import pallas as pl
from jax.experimental.pallas import tpu as pltpu


def single_attention_add_kernel(x_ref, xlast_ref, wx_ref, wt_ref, bh_ref, wa_ref,
                                v_ref, a_ref):
    """One grid step == one block of BB batch elements.

    x_ref    : (BB, T, D)  block of the time series
    xlast_ref: (BB, D)     last time step of each batch (gathered in the wrapper)
    wx_ref   : (D, H)      resident across the grid
    wt_ref   : (D, H)      resident across the grid
    bh_ref   : (1, H)
    wa_ref   : (1, H)      Wa transposed to a row
    v_ref    : (BB, D)     context vector output (sublane/lane dense)
    a_ref    : (BB, T)     attention weights output (lane dense)
    """
    BB, T, D = x_ref.shape
    H = wx_ref.shape[1]

    xb = x_ref[...].astype(jnp.float32)                        # (BB, T, D)
    wx = wx_ref[...].astype(jnp.float32)                       # (D, H)
    wt = wt_ref[...].astype(jnp.float32)                       # (D, H)

    # k = x @ Wx as a single (BB*T, D) @ (D, H) MXU pass (M = BB*T).
    # Reshape only collapses leading dims (T == 8 -> sublane-tile aligned, free).
    k2 = jnp.dot(xb.reshape(BB * T, D), wx,
                 preferred_element_type=jnp.float32)           # (BB*T, H)

    # q = x[:, -1, :] @ Wt as a (BB, D) @ (D, H) matmul (no wasted rows).
    q = jnp.dot(xlast_ref[...].astype(jnp.float32), wt,
                preferred_element_type=jnp.float32)            # (BB, H)
    qb = q + bh_ref[...]                                       # hoisted (BB, H) add

    h = jnp.tanh(k2.reshape(BB, T, H) + qb[:, None, :])        # (BB, T, H)

    # e = h @ Wa as VPU multiply + XLU lane reduce (ba dropped: cancels in softmax).
    e = jnp.sum(h * wa_ref[...], axis=-1)                      # (BB, T) lane-dense

    # softmax over time (lane axis)
    m = jnp.max(e, axis=-1, keepdims=True)                     # (BB, 1)
    p = jnp.exp(e - m)                                         # (BB, T)
    s = jnp.sum(p, axis=-1, keepdims=True)                     # (BB, 1)
    a = p * pl.reciprocal(s, approx=True)                      # (BB, T)

    # v = a @ x per batch as VPU multiply + sublane reduce (no M=1 matmuls).
    v = jnp.sum(a[:, :, None] * xb, axis=1)                    # (BB, D)

    v_ref[...] = v.astype(v_ref.dtype)
    a_ref[...] = a.astype(a_ref.dtype)


def single_attention_add(x, Wt, Wx, bh, Wa, ba, block_batch=8):
    """Wrapper: batch padding / last-row gather / bias reshapes done here (free in XLA)."""
    B, T, D = x.shape
    H = Wt.shape[1]

    BB = int(block_batch)
    Bp = ((B + BB - 1) // BB) * BB                              # pad batch to a multiple of BB
    if Bp != B:
        x = jnp.pad(x, ((0, Bp - B), (0, 0), (0, 0)))           # zero batches -> uniform softmax, sliced off

    xlast = x[:, -1, :]                                         # (Bp, D) last-time-step gather
    bh2 = bh.reshape(1, H)
    wa_row = Wa.reshape(1, H)                                   # Wa is (H, 1)
    del ba  # scalar, uniform over time: softmax(e + ba) == softmax(e) -> no effect on (v, a)

    # Explicit VMEM budget (double-buffered blocks + resident weights + f32
    # intermediates, 2x headroom), clamped to a range that is safe on v5e/v6e/v7x.
    blk_bytes = 4 * (BB * T * D + BB * D + BB * D + BB * T)     # x, xlast, v, a blocks
    wgt_bytes = 4 * (2 * D * H + 2 * H)                         # Wx, Wt, bh, Wa
    tmp_bytes = 4 * (BB * T * D + 2 * BB * T * H + 2 * BB * H)  # xb, k/h, q/qb
    vmem_budget = 2 * (2 * blk_bytes + 2 * wgt_bytes + tmp_bytes)
    vmem_limit = int(min(max(vmem_budget, 16 * 1024 * 1024), 64 * 1024 * 1024))

    v, a = pl.pallas_call(
        single_attention_add_kernel,
        grid=(Bp // BB,),
        in_specs=[
            pl.BlockSpec((BB, T, D), lambda b: (b, 0, 0)),      # x batch block
            pl.BlockSpec((BB, D), lambda b: (b, 0)),            # last-time-step rows
            pl.BlockSpec((D, H), lambda b: (0, 0)),             # Wx (resident)
            pl.BlockSpec((D, H), lambda b: (0, 0)),             # Wt (resident)
            pl.BlockSpec((1, H), lambda b: (0, 0)),             # bh
            pl.BlockSpec((1, H), lambda b: (0, 0)),             # Wa^T
        ],
        out_specs=(
            pl.BlockSpec((BB, D), lambda b: (b, 0)),            # v (sublane/lane dense)
            pl.BlockSpec((BB, T), lambda b: (b, 0)),            # a (lane dense)
        ),
        out_shape=(jax.ShapeDtypeStruct((Bp, D), jnp.float32),
                   jax.ShapeDtypeStruct((Bp, T), jnp.float32)),
        compiler_params=pltpu.CompilerParams(
            dimension_semantics=("parallel",),                  # batch blocks split across TCs
            vmem_limit_bytes=vmem_limit),
    )(x, xlast, Wx, Wt, bh2, wa_row)

    return v[:B], a[:B]


def reference_forward(x, Wt, Wx, bh, Wa, ba):
    """Pure-JAX reference mirroring the PyTorch forward ('add' branch)."""
    B, T, D = x.shape
    H = Wt.shape[1]
    q = (x[:, -1, :] @ Wt).reshape(B, 1, H)
    k = x @ Wx
    h = jnp.tanh(q + k + bh)
    e = (h @ Wa).reshape(B, T) + ba[0]
    a = jax.nn.softmax(e, axis=-1)
    v = jnp.squeeze(a[:, None, :] @ x, axis=1)
    return v, a


def kaiming_uniform(key, shape):
    # Mimics nn.init.kaiming_uniform_(w, a=sqrt(5)) bound = 1/sqrt(fan_in),
    # where fan_in = shape[1] for 2D tensors (synthetic deterministic init).
    fan_in = shape[1]
    bound = 1.0 / math.sqrt(fan_in)
    return jax.random.uniform(key, shape, jnp.float32, -bound, bound)


if __name__ == "__main__":
    # batch, time_step, attention_input_dim, attention_hidden_dim
    # B=16 with block_batch=8 gives an even grid of 2 (keeps both v7x TCs busy).
    B, T, D, H = 16, 8, 32, 32

    key = jax.random.PRNGKey(0)
    kx, kt, kw, ka = jax.random.split(key, 4)

    x = jax.random.normal(kx, (B, T, D), jnp.float32)
    Wt = kaiming_uniform(kt, (D, H))
    Wx = kaiming_uniform(kw, (D, H))
    Wa = kaiming_uniform(ka, (H, 1))
    bh = jnp.zeros((H,), jnp.float32)
    ba = jnp.zeros((1,), jnp.float32)

    v, a = single_attention_add(x, Wt, Wx, bh, Wa, ba, block_batch=8)
    v, a = jax.block_until_ready((v, a))

    v_ref, a_ref = reference_forward(x, Wt, Wx, bh, Wa, ba)
    assert v.shape == (B, D) and a.shape == (B, T)
    # Tolerance accounts for pl.reciprocal(approx=True) in the softmax normalize.
    assert jnp.allclose(v, v_ref, atol=2e-3, rtol=2e-3)
    assert jnp.allclose(a, a_ref, atol=2e-3, rtol=2e-3)

    print("KERNEL_OK")
</pallas_src>

<mosaic_0001>
module attributes {stable_mosaic.version = 11 : i64} {
  func.func @single_attention_add_kernel(%arg0: i32, %arg1: memref<8x8x32xf32, #tpu.memory_space<vmem>>, %arg2: memref<8x32xf32, #tpu.memory_space<vmem>>, %arg3: memref<32x32xf32, #tpu.memory_space<vmem>>, %arg4: memref<32x32xf32, #tpu.memory_space<vmem>>, %arg5: memref<1x32xf32, #tpu.memory_space<vmem>>, %arg6: memref<1x32xf32, #tpu.memory_space<vmem>>, %arg7: memref<8x32xf32, #tpu.memory_space<vmem>>, %arg8: memref<8x8xf32, #tpu.memory_space<vmem>>) attributes {dimension_semantics = [#tpu.dimension_semantics<parallel>], iteration_bounds = array<i64: 2>, scalar_prefetch = 0 : i64, scratch_operands = 0 : i64, tpu.core_type = #tpu.core_type<tc>, window_params = [{transform_indices = @transform_0, window_bounds = array<i64: 8, 8, 32>}, {transform_indices = @transform_1, window_bounds = array<i64: 8, 32>}, {pipeline_mode = #tpu.pipeline_mode<synchronous>, transform_indices = @transform_2, window_bounds = array<i64: 32, 32>}, {pipeline_mode = #tpu.pipeline_mode<synchronous>, transform_indices = @transform_3, window_bounds = array<i64: 32, 32>}, {pipeline_mode = #tpu.pipeline_mode<synchronous>, transform_indices = @transform_4, window_bounds = array<i64: 1, 32>}, {pipeline_mode = #tpu.pipeline_mode<synchronous>, transform_indices = @transform_5, window_bounds = array<i64: 1, 32>}, {transform_indices = @transform_6, window_bounds = array<i64: 8, 32>}, {transform_indices = @transform_7, window_bounds = array<i64: 8, 8>}]} {
    %c0 = arith.constant 0 : index
    %c0_0 = arith.constant 0 : index
    %c0_1 = arith.constant 0 : index
    %0 = vector.load %arg1[%c0, %c0_0, %c0_1] : memref<8x8x32xf32, #tpu.memory_space<vmem>>, vector<8x8x32xf32>
    %c0_2 = arith.constant 0 : index
    %c0_3 = arith.constant 0 : index
    %1 = vector.load %arg3[%c0_2, %c0_3] : memref<32x32xf32, #tpu.memory_space<vmem>>, vector<32x32xf32>
    %c0_4 = arith.constant 0 : index
    %c0_5 = arith.constant 0 : index
    %2 = vector.load %arg4[%c0_4, %c0_5] : memref<32x32xf32, #tpu.memory_space<vmem>>, vector<32x32xf32>
    %3 = vector.shape_cast %0 : vector<8x8x32xf32> to vector<64x32xf32>
    %cst = arith.constant dense<0.000000e+00> : vector<64x32xf32>
    %4 = tpu.matmul %3, %1, %cst {dimension_numbers = #tpu.dot_dimension_numbers<[1], [0], [0], [1], [0, 0, 1, 1], [], []>} : vector<64x32xf32>, vector<32x32xf32>, vector<64x32xf32> -> vector<64x32xf32>
    %c0_6 = arith.constant 0 : index
    %c0_7 = arith.constant 0 : index
    %5 = vector.load %arg2[%c0_6, %c0_7] : memref<8x32xf32, #tpu.memory_space<vmem>>, vector<8x32xf32>
    %cst_8 = arith.constant dense<0.000000e+00> : vector<8x32xf32>
    %6 = tpu.matmul %5, %2, %cst_8 {dimension_numbers = #tpu.dot_dimension_numbers<[1], [0], [0], [1], [0, 0, 1, 1], [], []>} : vector<8x32xf32>, vector<32x32xf32>, vector<8x32xf32> -> vector<8x32xf32>
    %c0_9 = arith.constant 0 : index
    %c0_10 = arith.constant 0 : index
    %7 = vector.load %arg5[%c0_9, %c0_10] : memref<1x32xf32, #tpu.memory_space<vmem>>, vector<1x32xf32>
    %8 = vector.broadcast %7 : vector<1x32xf32> to vector<8x32xf32>
    %9 = arith.addf %6, %8 : vector<8x32xf32>
    %10 = vector.shape_cast %4 : vector<64x32xf32> to vector<8x8x32xf32>
    %11 = vector.shape_cast %9 : vector<8x32xf32> to vector<8x1x32xf32>
    %12 = vector.broadcast %11 : vector<8x1x32xf32> to vector<8x8x32xf32>
    %13 = arith.addf %10, %12 : vector<8x8x32xf32>
    %14 = math.tanh %13 : vector<8x8x32xf32>
    %c0_11 = arith.constant 0 : index
    %c0_12 = arith.constant 0 : index
    %15 = vector.load %arg6[%c0_11, %c0_12] : memref<1x32xf32, #tpu.memory_space<vmem>>, vector<1x32xf32>
    %16 = vector.shape_cast %15 : vector<1x32xf32> to vector<1x1x32xf32>
    %17 = vector.broadcast %16 : vector<1x1x32xf32> to vector<8x8x32xf32>
    %18 = arith.mulf %14, %17 : vector<8x8x32xf32>
    %cst_13 = arith.constant dense<0.000000e+00> : vector<8x8xf32>
    %19 = vector.multi_reduction <add>, %18, %cst_13 [2] : vector<8x8x32xf32> to vector<8x8xf32>
    %cst_14 = arith.constant dense<0xFF800000> : vector<8xf32>
    %20 = vector.multi_reduction <maximumf>, %19, %cst_14 [1] : vector<8x8xf32> to vector<8xf32>
    %21 = vector.shape_cast %20 : vector<8xf32> to vector<8x1xf32>
    %22 = vector.broadcast %21 : vector<8x1xf32> to vector<8x8xf32>
    %23 = arith.subf %19, %22 : vector<8x8xf32>
    %24 = math.exp %23 : vector<8x8xf32>
    %cst_15 = arith.constant dense<0.000000e+00> : vector<8xf32>
    %25 = vector.multi_reduction <add>, %24, %cst_15 [1] : vector<8x8xf32> to vector<8xf32>
    %26 = vector.shape_cast %25 : vector<8xf32> to vector<8x1xf32>
    %27 = tpu.reciprocal %26 {approx = true} : vector<8x1xf32> -> vector<8x1xf32>
    %28 = vector.broadcast %27 : vector<8x1xf32> to vector<8x8xf32>
    %29 = arith.mulf %24, %28 : vector<8x8xf32>
    %30 = vector.shape_cast %29 : vector<8x8xf32> to vector<8x8x1xf32>
    %31 = vector.broadcast %30 : vector<8x8x1xf32> to vector<8x8x32xf32>
    %32 = arith.mulf %31, %0 : vector<8x8x32xf32>
    %cst_16 = arith.constant dense<0.000000e+00> : vector<8x32xf32>
    %33 = vector.multi_reduction <add>, %32, %cst_16 [1] : vector<8x8x32xf32> to vector<8x32xf32>
    %c0_17 = arith.constant 0 : index
    %c0_18 = arith.constant 0 : index
    %34 = vector.load %arg7[%c0_17, %c0_18] : memref<8x32xf32, #tpu.memory_space<vmem>>, vector<8x32xf32>
    tpu.vector_store %arg7[%c0_17, %c0_18], %33 {strides = array<i32>} : memref<8x32xf32, #tpu.memory_space<vmem>>, vector<8x32xf32>,
    %c0_19 = arith.constant 0 : index
    %c0_20 = arith.constant 0 : index
    %35 = vector.load %arg8[%c0_19, %c0_20] : memref<8x8xf32, #tpu.memory_space<vmem>>, vector<8x8xf32>
    tpu.vector_store %arg8[%c0_19, %c0_20], %29 {strides = array<i32>} : memref<8x8xf32, #tpu.memory_space<vmem>>, vector<8x8xf32>,
    return
  }
  func.func @transform_0(%arg0: i32) -> (i32, i32, i32) {
    %c0_i32 = arith.constant 0 : i32
    %c0_i32_0 = arith.constant 0 : i32
    %c0_i32_1 = arith.constant 0 : i32
    return %arg0, %c0_i32, %c0_i32_0 : i32, i32, i32
  }
  func.func @transform_1(%arg0: i32) -> (i32, i32) {
    %c0_i32 = arith.constant 0 : i32
    %c0_i32_0 = arith.constant 0 : i32
    return %arg0, %c0_i32 : i32, i32
  }
  func.func @transform_2(%arg0: i32) -> (i32, i32) {
    %c0_i32 = arith.constant 0 : i32
    %c0_i32_0 = arith.constant 0 : i32
    %c0_i32_1 = arith.constant 0 : i32
    return %c0_i32, %c0_i32_0 : i32, i32
  }
  func.func @transform_3(%arg0: i32) -> (i32, i32) {
    %c0_i32 = arith.constant 0 : i32
    %c0_i32_0 = arith.constant 0 : i32
    %c0_i32_1 = arith.constant 0 : i32
    return %c0_i32, %c0_i32_0 : i32, i32
  }
  func.func @transform_4(%arg0: i32) -> (i32, i32) {
    %c0_i32 = arith.constant 0 : i32
    %c0_i32_0 = arith.constant 0 : i32
    %c0_i32_1 = arith.constant 0 : i32
    return %c0_i32, %c0_i32_0 : i32, i32
  }
  func.func @transform_5(%arg0: i32) -> (i32, i32) {
    %c0_i32 = arith.constant 0 : i32
    %c0_i32_0 = arith.constant 0 : i32
    %c0_i32_1 = arith.constant 0 : i32
    return %c0_i32, %c0_i32_0 : i32, i32
  }
  func.func @transform_6(%arg0: i32) -> (i32, i32) {
    %c0_i32 = arith.constant 0 : i32
    %c0_i32_0 = arith.constant 0 : i32
    return %arg0, %c0_i32 : i32, i32
  }
  func.func @transform_7(%arg0: i32) -> (i32, i32) {
    %c0_i32 = arith.constant 0 : i32
    %c0_i32_0 = arith.constant 0 : i32
    return %arg0, %c0_i32 : i32, i32
  }
}

</mosaic_0001>

<bundles_post_ra>
// kernel: tpu_custom_call.1
= control target key start
LH: loop header
LB: loop body
LE: loop exit
PB: predicated region body
PF: predicated region fallthrough
CT: control target
= control target key end

     0   :  { %s1749_s0 = inlined_call_operand.hbm [shape: f32[16,8,32], index: 0, kind: input, shape index: {}]   ;;  %s1750_s1 = inlined_call_operand.hbm [shape: f32[16,32], index: 1, kind: input, shape index: {}]   ;;  %s1751_s2 = inlined_call_operand.hbm [shape: f32[32,32], index: 2, kind: input, shape index: {}]   ;;  %s1752_s3 = inlined_call_operand.hbm [shape: f32[32,32], index: 3, kind: input, shape index: {}]   ;;  %s1753_s4 = inlined_call_operand.vmem [shape: f32[1,32], index: 4, kind: input, shape index: {}]   ;;  %s1754_s5 = inlined_call_operand.vmem [shape: f32[1,32], index: 5, kind: input, shape index: {}]   ;;  %s1755_s6 = inlined_call_operand.hbm [shape: f32[16,32], index: 6, kind: output, shape index: {0}]   ;;  %s1756_s7 = inlined_call_operand.vmem [shape: f32[16,8], index: 7, kind: output, shape index: {1}]  }
   0x1   :  { %1763 = sst [smem:[#allocation20_spill]] %s1751_s2 }
   0x2   :  { %1764 = sst [smem:[#allocation21_spill]] %s1752_s3 }
   0x3   :  { %13 = vsyncpa [#allocation3], 0 }
   0x4   :  { %15 = vsyncpa [#allocation3 + $0x1], 0 }
   0x5   :  { %16 = vsyncpa [#allocation6], 0 }
   0x6   :  { %18 = vsyncpa [#allocation6 + $0x1], 0 }
   0x7   :  { %19 = vsyncpa [#allocation9], 0 }
   0x8   :  { %20 = vsyncpa [#allocation4], 0 }
   0x9   :  { %22 = vsyncpa [#allocation4 + $0x1], 0  ;;  %s1419_s24 = smov 0   ;;  %s1421_s25 = smov 0  }
   0xa   :  { %s1423_s26 = smov 0   ;;  %s1425_s27 = smov 0  }
   0xb LB: > { %1765 = sst [smem:[#allocation16_spill]] %s1368_s26  ;;  %s1440_s28 = sadd.s32 4294967295, %s1372_s27   ;;  %s1372_s27 = sphi %s1425_s27, %s1780_s27   ;;  %s1368_s26 = sphi %s1423_s26, %s1782_s26   ;;  %s1364_s25 = sphi %s1421_s25, %s1784_s25   ;;  %s1360_s24 = sphi %s1419_s24, %s1783_s24  }
   0xc   : > { %s1021_s29 = sadd.s32 4294967294, %s1372_s27   ;;  %p48_p0 = scmp.ne.s32.totalorder %s1364_s25, %s1360_s24 }
   0xd   : > { %p49_p1 = scmp.eq.s32.totalorder %s1440_s28, 0  ;;  %p182_p2 = scmp.eq.s32.totalorder %s1440_s28, 1 }
   0xe   : > { %p188_p3 = scmp.eq.s32.totalorder %s1021_s29, 1  ;;  %p1022_p5 = scmp.ge.s32.totalorder %s1372_s27, 1 }
   0xf   : > { %p1449_p4 = por %p49_p1, %p48_p0  ;;  %p221_p7 = scmp.lt.s32.totalorder %s1372_s27, 3 }
  0x10   : > { %p1454_p6 = por %p188_p3, %p48_p0  ;;  %s1769_s2 = sld [smem:[#allocation20_spill]] }
  0x11   : > { %p1462_p8 = pnand %p1022_p5, %p221_p7  ;;  %s1374_s13 = smov [#allocation7]  }
  0x12   : > { %s1767_s8 = scalar_select %p1454_p6, 1, 0 }
  0x13   : > { %p1074_p9 = pneg %p1462_p8  ;;  %s234_s14 = sshll.u32 %s1374_s13, 4  ;;  %s235_s14 = int_to_ptr.vmem [resolvable:$true] %s234_s14 }
  0x14   : > { %1768 = sst [smem:[#allocation17_spill]] %s1767_s8  ;;  %s1757_s18 = smov 128  }
  0x15   : > { %p1075_p10 = pnand %p1074_p9, %p49_p1  ;;  %s1771_s3 = sld [smem:[#allocation21_spill]] }
  0x16   : > { %s232_s11 = sshll.u32 %s1769_s2, 4  ;;  %s1758_s19 = smov 8   ;;  %s233_s11 = int_to_ptr.hbm [resolvable:$true] %s232_s11 }
  0x17   : > { %1077 = dma.hbm_to_vmem [thread:$0]  (!%p1075_p10), %s233_s11, 512, %s235_s14, [#allocation6], %s1757_s18, %s1757_s18, %s1758_s19  }
  0x18   : > { %s1377_s20 = smov [#allocation8]   ;;  %s1481_s22 = sadd.s32 1, %s1372_s27  }
  0x19   : > { %s248_s21 = sshll.u32 %s1377_s20, 4  ;;  %1772 = sst [smem:[#allocation18_spill]] %s1481_s22  ;;  %s249_s21 = int_to_ptr.vmem [resolvable:$true] %s248_s21 }
  0x1a   : > { %s35_s23 = sadd.s32 1, %s1368_s26  ;;  %s32_s29 = ssub.s32 %s1372_s27, %s1481_s22 }
  0x1b   : > { %s246_s17 = sshll.u32 %s1771_s3, 4  ;;  %p42_p12 = scmp.ne.s32.totalorder %s1368_s26, %s1364_s25  ;;  %s247_s17 = int_to_ptr.hbm [resolvable:$true] %s246_s17 }
  0x1c   : > { %1080 = dma.hbm_to_vmem [thread:$0]  (!%p1075_p10), %s247_s17, 512, %s249_s21, [#allocation9], %s1757_s18, %s1757_s18, %s1758_s19  }
  0x1d   : > { %p33_p13 = scmp.eq.s32.totalorder %s32_s29, 0  ;;  %p43_p0 = scmp.eq.s32.totalorder %s1372_s27, 0 }
  0x1e   : > { %p1491_p3 = por %p182_p2, %p42_p12  ;;  %p1094_p5 = scmp.lt.s32.totalorder %s1372_s27, 2 }
  0x1f   : > { %s1497_s10 = scalar_select %p33_p13, %s1368_s26, %s35_s23  }
  0x20   : > { %p44_p7 = por %p43_p0, %p42_p12  ;;  %s1500_s11 = sand.u32 1, %s1368_s26  }
  0x21   : > { %1774 = sst [smem:[#allocation19_spill]] %s1497_s10  ;;  %s1026_s13 = sshll.u32 %s1500_s11, 6 }
  0x22   : > { %s1051_s14 = sshll.u32 %s1372_s27, 6  ;;  %s272_s20 = scalar_lea.vmem [#allocation2], %s1026_s13 }
  0x23   : > { %s277_s17 = scalar_lea.hbm %s1749_s0, %s1051_s14  ;;  %s280_s21 = sshll.u32 %s272_s20, 4  ;;  %s281_s21 = int_to_ptr.vmem [resolvable:$true] %s280_s21 }
  0x24   : > { %s278_s29 = sshll.u32 %s277_s17, 4  ;;  %p1507_p2 = pnand %p1094_p5, %p44_p7  ;;  %s279_s29 = int_to_ptr.hbm [resolvable:$true] %s278_s29 }
  0x25   : > { %s290_s18 = sand.u32 1, %s1372_s27   ;;  %s1029_s19 = sshll.u32 %s1500_s11, 3 }
  0x26   : > { %s269_s2 = scalar_lea.sflag [#allocation3], %s1500_s11  ;;  %s1234_s3 = sshra.s32 %s279_s29, 4  ;;  %s1235_s3 = int_to_ptr.hbm [resolvable:$true] %s1234_s3 }
  0x27   : > { %s1236_s10 = scalar_lea.hbm %s1235_s3, 64  ;;  %p1238_p10 = pneg %p1507_p2 }
  0x28   : > { %p1237_p9 = scmp.ne.s32.totalorder %s1235_s3, %s1236_s10  ;;  %s1241_s15 = scalar_lea.hbm %s1749_s0, 128 }
  0x29   : > { %p1242_p0 = scmp.lt.s32.totalorder %s1235_s3, %s1749_s0  ;;  %p1243_p5 = scmp.lt.s32.totalorder %s1241_s15, %s1236_s10 }
  0x2a   : > { %p1239_p12 = pnand %p1238_p10, %p1237_p9 }
  0x2b   : > { %p1244_p7 = por %p1243_p5, %p1242_p0 }
  0x2c   : > { %p1240_p13 = pneg %p1239_p12 }
  0x2e   : > { %p1245_p11 = pnand %p1244_p7, %p1240_p13 }
  0x30   : > { %1248 = shalt.err (!%p1245_p11)
}
  0x31   : > { %s1776_s11 = smov 8   ;;  %s1777_s20 = smov 128  }
  0x32   : > { %1084 = dma.hbm_to_vmem [thread:$0]  (!%p1507_p2), %s279_s29, 1024, %s281_s21, %s269_s2, %s1777_s20, %s1777_s20, %s1776_s11  }
  0x33   : > { %s1030_s26 = sshll.u32 %s1372_s27, 3  ;;  %s294_s8 = scalar_lea.vmem [#allocation5], %s1029_s19 }
  0x34   : > { %s298_s14 = scalar_lea.hbm %s1750_s1, %s1030_s26  ;;  %s302_s16 = sshll.u32 %s294_s8, 4  ;;  %s303_s16 = int_to_ptr.vmem [resolvable:$true] %s302_s16 }
  0x35   : > { %s300_s3 = sshll.u32 %s298_s14, 4  ;;  %s291_s10 = scalar_lea.sflag [#allocation6], %s290_s18  ;;  %s301_s3 = int_to_ptr.hbm [resolvable:$true] %s300_s3 }
  0x36   : > { %s1264_s15 = sshra.s32 %s301_s3, 4  ;;  %s1271_s29 = scalar_lea.hbm %s1750_s1, 16  ;;  %s1265_s15 = int_to_ptr.hbm [resolvable:$true] %s1264_s15 }
  0x37   : > { %s1266_s17 = scalar_lea.hbm %s1265_s15, 8  ;;  %p1272_p13 = scmp.lt.s32.totalorder %s1265_s15, %s1750_s1 }
  0x38   : > { %p1267_p11 = scmp.ne.s32.totalorder %s1265_s15, %s1266_s17  ;;  %p1273_p0 = scmp.lt.s32.totalorder %s1271_s29, %s1266_s17 }
  0x3a   : > { %p1269_p9 = pnand %p1267_p11, %p1238_p10  ;;  %p1274_p5 = por %p1273_p0, %p1272_p13 }
  0x3c   : > { %p1270_p12 = pneg %p1269_p9 }
  0x3e   : > { %p1275_p7 = pnand %p1274_p5, %p1270_p12 }
  0x40   : > { %1278 = shalt.err (!%p1275_p7)
}
  0x41   : > { %1087 = dma.hbm_to_vmem [thread:$0]  (!%p1507_p2), %s301_s3, 128, %s303_s16, %s291_s10  }
  0x42   : > { %311 = sbr.rel (%p1462_p8) target bundleno = 929 (0x3a1), region = 44  ;;  %s1548_s8 = sand.u32 (!%p1462_p8), 1, %s1364_s25  }
  0x43   : > { %s1032_s18 = sshll.u32 (!%p1462_p8), %s1548_s8, 6  ;;  %s314_s19 = scalar_lea.sflag (!%p1462_p8), [#allocation3], %s1548_s8 }
  0x44   : > { %s1552_s11 = scalar_lea.vmem (!%p1462_p8), [#allocation2], %s1032_s18 }
  0x47   : > { %1339 = dma.done.wait (%p1449_p4), %s314_s19, 1024  }
  0x48   : > { %1341 = vsyncadd (%p1449_p4), %s314_s19, 4294966272  ;;  %s323_s12 = sand.u32 1, %s1440_s28   ;;  %s1033_s23 = sshll.u32 %s1548_s8, 3 }
  0x49   : > { %s324_s20 = scalar_lea.sflag [#allocation6], %s323_s12  ;;  %s327_s13 = scalar_lea.vmem [#allocation5], %s1033_s23 }
  0x4a   : > { %1343 = dma.done.wait (%p1449_p4), %s324_s20, 128  }
  0x4b   : > { %1345 = vsyncadd (%p1449_p4), %s324_s20, 4294967168 }
  0x4c   : > { %1347 = dma.done.wait (%p49_p1), [#allocation6], 512  }
  0x4d   : > { %1349 = vsyncadd (%p49_p1), [#allocation6], 4294966784 }
  0x4e   : > { %1351 = dma.done.wait (%p49_p1), [#allocation9], 512  }
  0x4f   : > { %1353 = vsyncadd (%p49_p1), [#allocation9], 4294966784  ;;  %v394_v0 = vld [vmem:[#allocation7 + $0x18] sm:$0xff]  ;;  %v393_v2 = vld [vmem:[#allocation7 + $0x10] sm:$0xff]  ;;  %vm399_vm0 = vcmask 261120   ;;  %vm587_vm1 = vcmask 1041409  }
  0x50   : > { %v398_v1 = vld [vmem:[#allocation8 + $0x18] sm:$0xff]  ;;  %1052 = vmatpush.msra.mxu2 %v394_v0  ;;  %1053 = vmatpush.msra.mxu3 %v394_v0  ;;  %v397_v3 = vld [vmem:[#allocation8 + $0x10] sm:$0xff]  ;;  %v392_v4 = vld [vmem:[#allocation7 + $0x8] sm:$0xff]  ;;  %vm589_vm2 = vcmask 1042434   ;;  %vm591_vm3 = vcmask 1043459   ;;  %vm593_vm4 = vcmask 1044484  }
  0x51   : > { %485 = vmatpush.msra.mxu1 %v398_v1  ;;  %436 = vmatpush.msra.mxu0 %v394_v0  ;;  %v396_v5 = vld [vmem:[#allocation8 + $0x8] sm:$0xff]  ;;  %v391_v6 = vld [vmem:[#allocation7] sm:$0xff]  ;;  %v1578_v9 = vld [vmem:[%s1552_s11 + $0x28] sm:$0xff]  ;;  %vm595_vm5 = vcmask 1045509   ;;  %vm597_vm6 = vcmask 1046534   ;;  %vm599_vm7 = vcmask 1047559  }
  0x52   : > { %1054 = vmatpush.msra.mxu2 %v393_v2  ;;  %1055 = vmatpush.msra.mxu3 %v393_v2  ;;  %v395_v7 = vld [vmem:[#allocation8] sm:$0xff]  ;;  %v465_v10 = vld [vmem:[%s327_s13] sm:$0xff]  ;;  %v1591_v12 = vld [vmem:[%s1552_s11 + $0x18] sm:$0xff]  ;;  %vm602_vm8 = vcmask 64512   ;;  %p379_p1 = scmp.lt.s32.totalorder %s1440_s28, 1  ;;  %s1048_s29 = sshll.u32 %s1440_s28, 3 }
  0x53   : > { %486 = vmatpush.msra.mxu1 %v397_v3  ;;  %437 = vmatpush.msra.mxu0 %v393_v2  ;;  %v1575_v8 = vld [vmem:[%s1552_s11 + $0x10] sm:$0xff]  ;;  %v1583_v11 = vld [vmem:[%s1552_s11] sm:$0xff]  ;;  %v1599_v14 = vld [vmem:[%s1552_s11 + $0x8] sm:$0xff]  ;;  %s877_s18 = scalar_lea.hbm %s1755_s6, %s1048_s29  ;;  %s863_s12 = scalar_lea.sflag [#allocation4], %s1548_s8 }
  0x54   : > { %1056 = vmatpush.msra.mxu2 %v392_v4  ;;  %1057 = vmatpush.msra.mxu3 %v392_v4  ;;  %v1594_v13 = vld [vmem:[%s1552_s11 + $0x30] sm:$0xff]  ;;  %v1606_v15 = vld [vmem:[%s1552_s11 + $0x20] sm:$0xff]  ;;  %v1609_v16 = vld [vmem:[%s1552_s11 + $0x38] sm:$0xff]  ;;  %s380_s10 = scalar_select %p379_p1, %s1440_s28, 1 }
  0x55   : > { %487 = vmatpush.msra.mxu1 %v396_v5  ;;  %438 = vmatpush.msra.mxu0 %v392_v4  ;;  %v1138_v17 = vld [vmem:[%s1753_s4] ss:$0 sm:$0xff]  ;;  %s371_s28 = scalar_lea.vmem [#allocation10], %s1033_s23  ;;  %s881_s11 = sshll.u32 %s877_s18, 4  ;;  %s882_s11 = int_to_ptr.hbm [resolvable:$true] %s881_s11 }
  0x56   : > { %1058 = vmatpush.msra.mxu2 %v391_v6  ;;  %1059 = vmatpush.msra.mxu3 %v391_v6  ;;  %v1139_v34 = vld [vmem:[%s1754_s5] ss:$0 sm:$0xff]  ;;  %s1037_s15 = sshll.u32 %s380_s10, 3  ;;  %s879_s19 = sshll.u32 %s371_s28, 4  ;;  %s880_s19 = int_to_ptr.vmem [resolvable:$true] %s879_s19 }
  0x57   : > { %488 = vmatpush.msra.mxu1 %v395_v7  ;;  %1040 = vmatmul.msk.f32.vlgmr.msra.gmra.mxu2 %vm399_vm0, %v1575_v8  ;;  %s382_s21 = scalar_lea.vmem %s1756_s7, %s1037_s15  ;;  %s1308_s20 = sshra.s32 %s882_s11, 4  ;;  %s1309_s20 = int_to_ptr.hbm [resolvable:$true] %s1308_s20 }
  0x58   : > { %1043 = vmatmul.msk.f32.vlgmr.msra.gmra.mxu3 %vm399_vm0, %v1578_v9  ;;  %1046 = vmatmul.msk.f32.vlgmr.msra.gmra.mxu1 %vm399_vm0, %v465_v10  ;;  %s1310_s13 = scalar_lea.hbm %s1309_s20, 8  ;;  %s1314_s14 = scalar_lea.hbm %s1755_s6, 16 }
  0x59   : > { %439 = vmatpush.msra.mxu0 %v391_v6  ;;  %p1311_p4 = scmp.ne.s32.totalorder %s1309_s20, %s1310_s13  ;;  %p1315_p10 = scmp.lt.s32.totalorder %s1309_s20, %s1755_s6 }
  0x5a   : > { %1038 = vmatmul.msk.f32.vlgmr.msra.gmra.mxu0 %vm399_vm0, %v1583_v11  ;;  %p1316_p11 = scmp.lt.s32.totalorder %s1314_s14, %s1310_s13 }
  0x5b   : > { %p1312_p8 = pnand %p1311_p4, %p1491_p3 }
  0x5c   : > { %p1317_p9 = por %p1316_p11, %p1315_p10 }
  0x5d   : > { %p1313_p2 = pneg %p1312_p8 }
  0x5f   : > { %1041 = vmatmul.msk.f32.gmra.mxu2 %vm399_vm0, %v1591_v12  ;;  %p1318_p12 = pnand %p1317_p9, %p1313_p2 }
  0x60   : > { %1044 = vmatmul.msk.f32.gmra.mxu3 %vm399_vm0, %v1594_v13 }
  0x62   : > { %1039 = vmatmul.msk.f32.gmra.mxu0 %vm399_vm0, %v1599_v14 }
  0x67   : > { %1042 = vmatmul.msk.f32.gmra.mxu2 %vm399_vm0, %v1606_v15 }
  0x68   : > { %1045 = vmatmul.msk.f32.gmra.mxu3 %vm399_vm0, %v1609_v16 }
  0xd5   : > { %v490_v18 = vpop.f32.mrf.mxu1 }
  0xd6   : > { %v491_v19 = vadd.f32 %v1138_v17, %v490_v18 }
  0xd7   : > { %v441_v20 = vpop.f32.mrf.mxu0 }
  0xd8   : > { %v501_v21 = vperm.slane %v491_v19, 0  ;;  %v495_v22 = vrot.slane %v491_v19, 2  ;;  %v494_v23 = vrot.slane %v491_v19, 1  ;;  %v496_v28 = vrot.slane %v491_v19, 3 }
  0xd9   : > { %v499_v31 = vrot.slane %v491_v19, 6  ;;  %v498_v43 = vrot.slane %v491_v19, 5  ;;  %v497_v47 = vrot.slane %v491_v19, 4  ;;  %v500_v48 = vrot.slane %v491_v19, 7 }
  0xda   : > { %v517_v24 = vadd.f32 %v501_v21, %v441_v20  ;;  %v447_v25 = vpop.f32.mrf.mxu2  ;;  %v503_v26 = vperm.slane %v495_v22, 0  ;;  %v502_v30 = vperm.slane %v494_v23, 0  ;;  %v504_v33 = vperm.slane %v496_v28, 0 }
  0xdb   : > { %v456_v27 = vpop.f32.mrf.mxu3  ;;  %v507_v36 = vperm.slane %v499_v31, 0  ;;  %v506_v51 = vperm.slane %v498_v43, 0  ;;  %v505_v52 = vperm.slane %v497_v47, 0  ;;  %v508_v55 = vperm.slane %v500_v48, 0 }
  0xdc   : > { %1140 = vtanh.f32 %v517_v24  ;;  %v519_v29 = vadd.f32 %v503_v26, %v447_v25  ;;  %v577_v22 = vlaneseq }
  0xdd   : > { %v522_v62 = vadd.f32 %v506_v51, %v456_v27 }
  0xde   : > { %1142 = vtanh.f32 %v519_v29  ;;  %v1629_v24 = vand.u32 127, %v577_v22 }
  0xdf   : > { %v444_v32 = vpop.f32.mrf.mxu0 }
  0xe0   : > { %v518_v35 = vadd.f32 %v502_v30, %v444_v32 }
  0xe2   : > { %v1141_v37 = vpop.eup %1140  ;;  %1144 = vtanh.f32 %v518_v35  ;;  %v450_v38 = vpop.f32.mrf.mxu2 }
  0xe3   : > { %v520_v39 = vadd.f32 %v504_v33, %v450_v38  ;;  %v459_v40 = vpop.f32.mrf.mxu3  ;;  %v537_v41 = vmul.f32 %v1141_v37, %v1139_v34 }
  0xe4   : > { %v1143_v42 = vpop.eup %1142  ;;  %v523_v44 = vadd.f32 %v507_v36, %v459_v40 }
  0xe5   : > { %1146 = vtanh.f32 %v520_v39  ;;  %v545_v45 = vsel %vm399_vm0, %v537_v41, 0.0  ;;  %v539_v46 = vmul.f32 %v1143_v42, %v1139_v34 }
  0xe6   : > { %546 = vadd.xlane.f32.xlu0 %v545_v45  ;;  %1148 = vtanh.f32 %v523_v44 }
  0xe7   : > { %v551_v49 = vsel %vm399_vm0, %v539_v46, 0.0  ;;  %v1378_v46 = vmov 0  }
  0xe8   : > { %v1145_v50 = vpop.eup %1144  ;;  %552 = vadd.xlane.f32.xlu1 %v551_v49  ;;  %1137 = vset.pattern.permute.xlu2 %v1378_v46 }
  0xe9   : > { %v538_v53 = vmul.f32 %v1145_v50, %v1139_v34  ;;  %1136 = vset.pattern.permute.xlu1 %v1378_v46  ;;  %1135 = vset.pattern.permute.xlu0 %v1378_v46 }
  0xea   : > { %v453_v54 = vpop.f32.mrf.mxu2 }
  0xeb   : > { %v1147_v56 = vpop.eup %1146  ;;  %v521_v57 = vadd.f32 %v505_v52, %v453_v54  ;;  %v462_v58 = vpop.f32.mrf.mxu3  ;;  %v548_v59 = vsel %vm399_vm0, %v538_v53, 0.0 }
  0xec   : > { %v524_v60 = vadd.f32 %v508_v55, %v462_v58  ;;  %v540_v61 = vmul.f32 %v1147_v56, %v1139_v34  ;;  %v1149_v63 = vpop.eup %1148 }
  0xed   : > { %1150 = vtanh.f32 %v521_v57  ;;  %v543_v1 = vmul.f32 %v1149_v63, %v1139_v34 }
  0xee   : > { %1152 = vtanh.f32 %v524_v60  ;;  %549 = vadd.xlane.f32.xlu0 %v548_v59  ;;  %v554_v0 = vsel %vm399_vm0, %v540_v61, 0.0 }
  0xef   : > { %1154 = vtanh.f32 %v522_v62  ;;  %v563_v5 = vsel %vm399_vm0, %v543_v1, 0.0 }
  0xf0   : > { %555 = vadd.xlane.f32.xlu1 %v554_v0 }
  0xf3   : > { %v1151_v2 = vpop.eup %1150 }
  0xf4   : > { %v1153_v3 = vpop.eup %1152  ;;  %v541_v4 = vmul.f32 %v1151_v2, %v1139_v34 }
  0xf5   : > { %v544_v6 = vmul.f32 %v1153_v3, %v1139_v34  ;;  %v1155_v10 = vpop.eup %1154 }
  0xf6   : > { %564 = vadd.xlane.f32.xlu0 %v563_v5  ;;  %v557_v7 = vsel %vm399_vm0, %v541_v4, 0.0  ;;  %v542_v18 = vmul.f32 %v1155_v10, %v1139_v34 }
  0xf7   : > { %v566_v17 = vsel %vm399_vm0, %v544_v6, 0.0  ;;  %558 = vadd.xlane.f32.xlu2 %v557_v7 }
  0xf8   : > { %567 = vadd.xlane.f32.xlu1 %v566_v17  ;;  %v560_v19 = vsel %vm399_vm0, %v542_v18, 0.0 }
  0xff   : > { %561 = vadd.xlane.f32.xlu2 %v560_v19 }
 0x159   : > { %v547_v20 = vpop.xlane.xlu0 %546 }
 0x15a   : > { %v579_v26 = vperm.slane %v547_v20, %v1629_v24 }
 0x15b   : > { %v553_v21 = vpop.xlane.xlu1 %552 }
 0x15c   : > { %v581_v30 = vperm.slane %v553_v21, %v1629_v24 }
 0x161   : > { %v550_v23 = vpop.xlane.xlu0 %549 }
 0x162   : > { %v580_v27 = vperm.slane %v550_v23, %v1629_v24 }
 0x163   : > { %v556_v25 = vpop.xlane.xlu1 %555 }
 0x164   : > { %v588_v29 = vsel %vm587_vm1, %v580_v27, %v579_v26  ;;  %v582_v31 = vperm.slane %v556_v25, %v1629_v24 }
 0x165   : > { %v590_v32 = vsel %vm589_vm2, %v581_v30, %v588_v29 }
 0x166   : > { %v592_v37 = vsel %vm591_vm3, %v582_v31, %v590_v32 }
 0x169   : > { %v565_v34 = vpop.xlane.xlu0 %564 }
 0x16a   : > { %v559_v28 = vpop.xlane.xlu2 %558  ;;  %v585_v39 = vperm.slane %v565_v34, %v1629_v24 }
 0x16b   : > { %v583_v33 = vperm.slane %v559_v28, %v1629_v24  ;;  %v568_v35 = vpop.xlane.xlu1 %567 }
 0x16c   : > { %v586_v41 = vperm.slane %v568_v35, %v1629_v24 }
 0x16d   : > { %v594_v40 = vsel %vm593_vm4, %v583_v33, %v592_v37 }
 0x172   : > { %v562_v36 = vpop.xlane.xlu2 %561 }
 0x173   : > { %v584_v38 = vperm.slane %v562_v36, %v1629_v24 }
 0x175   : > { %v596_v42 = vsel %vm595_vm5, %v584_v38, %v594_v40 }
 0x176   : > { %v598_v43 = vsel %vm597_vm6, %v585_v39, %v596_v42 }
 0x177   : > { %v600_v44 = vsel %vm599_vm7, %v586_v41, %v598_v43 }
 0x178   : > { %v603_v45 = vsel %vm602_vm8, %v600_v44, -inf }
 0x179   : > { %604 = vmax.xlane.f32.xlu2 %v603_v45 }
 0x1ec   : > { %v605_v47 = vpop.xlane.xlu2 %604 }
 0x1ed   : > { %v609_v48 = vperm.slane %v605_v47, 2  ;;  %v608_v49 = vperm.slane %v605_v47, 1  ;;  %v607_v50 = vperm.slane %v605_v47, 0  ;;  %v610_v54 = vperm.slane %v605_v47, 3 }
 0x1ee   : > { %v611_v55 = vperm.slane %v605_v47, 4  ;;  %v614_v56 = vperm.slane %v605_v47, 7  ;;  %v612_v0 = vperm.slane %v605_v47, 5  ;;  %v613_v2 = vperm.slane %v605_v47, 6 }
 0x1ef   : > { %v625_v51 = vsub.f32 %v553_v21, %v609_v48  ;;  %v624_v52 = vsub.f32 %v550_v23, %v608_v49  ;;  %v623_v53 = vsub.f32 %v547_v20, %v607_v50  ;;  %v626_v60 = vsub.f32 %v556_v25, %v610_v54 }
 0x1f0   : > { %v627_v61 = vsub.f32 %v559_v28, %v611_v55  ;;  %v630_v62 = vsub.f32 %v568_v35, %v614_v56  ;;  %v628_v7 = vsub.f32 %v562_v36, %v612_v0  ;;  %v629_v10 = vsub.f32 %v565_v34, %v613_v2 }
 0x1f1   : > { %v635_v57 = vmul.f32 1.442695, %v625_v51  ;;  %v633_v58 = vmul.f32 1.442695, %v624_v52  ;;  %v631_v59 = vmul.f32 1.442695, %v623_v53 }
 0x1f2   : > { %v637_v63 = vmul.f32 1.442695, %v626_v60  ;;  %v639_v1 = vmul.f32 1.442695, %v627_v61  ;;  %v645_v4 = vmul.f32 1.442695, %v630_v62 }
 0x1f3   : > { %1156 = vpow2.f32 %v635_v57  ;;  %v641_v17 = vmul.f32 1.442695, %v628_v7  ;;  %v643_v18 = vmul.f32 1.442695, %v629_v10 }
 0x1f4   : > { %1158 = vpow2.f32 %v633_v58 }
 0x1f5   : > { %1160 = vpow2.f32 %v631_v59 }
 0x1f6   : > { %1162 = vpow2.f32 %v637_v63 }
 0x1f7   : > { %1164 = vpow2.f32 %v639_v1 }
 0x1f8   : > { %1166 = vpow2.f32 %v645_v4 }
 0x1f9   : > { %v1647_v3 = vpop.eup %1156  ;;  %1168 = vpow2.f32 %v641_v17 }
 0x1fa   : > { %v1159_v5 = vpop.eup %1158  ;;  %662 = vperm.xlu2 %1137, %v1647_v3   ;;  %1170 = vpow2.f32 %v643_v18 }
 0x1fb   : > { %v1161_v6 = vpop.eup %1160  ;;  %659 = vperm.xlu1 %1136, %v1159_v5  }
 0x1fc   : > { %656 = vperm.xlu0 %1135, %v1161_v6   ;;  %v1163_v19 = vpop.eup %1162 }
 0x1fd   : > { %v1165_v20 = vpop.eup %1164 }
 0x1fe   : > { %v1167_v21 = vpop.eup %1166 }
 0x1ff   : > { %v1169_v22 = vpop.eup %1168 }
 0x200   : > { %v1171_v23 = vpop.eup %1170 }
 0x202   : > { %665 = vperm.xlu2 %1137, %v1163_v19  }
 0x203   : > { %668 = vperm.xlu1 %1136, %v1165_v20  }
 0x204   : > { %677 = vperm.xlu0 %1135, %v1167_v21  }
 0x20a   : > { %671 = vperm.xlu2 %1137, %v1169_v22  }
 0x20b   : > { %674 = vperm.xlu1 %1136, %v1171_v23  }
 0x254   : > { %v663_v25 = vpop.permute.xlu2 %662 }
 0x255   : > { %v681_v33 = vperm.slane %v663_v25, %v1629_v24 }
 0x25c   : > { %v666_v28 = vpop.permute.xlu2 %665 }
 0x25d   : > { %v682_v36 = vperm.slane %v666_v28, %v1629_v24 }
 0x264   : > { %v672_v37 = vpop.permute.xlu2 %671 }
 0x265   : > { %v684_v41 = vperm.slane %v672_v37, %v1629_v24 }
 0x26d   : > { %v660_v26 = vpop.permute.xlu1 %659 }
 0x26e   : > { %v657_v27 = vpop.permute.xlu0 %656  ;;  %v680_v29 = vperm.slane %v660_v26, %v1629_v24 }
 0x26f   : > { %v679_v30 = vperm.slane %v657_v27, %v1629_v24 }
 0x271   : > { %v687_v31 = vsel %vm587_vm1, %v680_v29, %v679_v30 }
 0x272   : > { %v688_v34 = vsel %vm589_vm2, %v681_v33, %v687_v31 }
 0x273   : > { %v689_v38 = vsel %vm591_vm3, %v682_v36, %v688_v34 }
 0x275   : > { %v669_v32 = vpop.permute.xlu1 %668 }
 0x276   : > { %v683_v35 = vperm.slane %v669_v32, %v1629_v24  ;;  %v678_v40 = vpop.permute.xlu0 %677 }
 0x277   : > { %v686_v44 = vperm.slane %v678_v40, %v1629_v24 }
 0x278   : > { %v690_v39 = vsel %vm593_vm4, %v683_v35, %v689_v38 }
 0x279   : > { %v691_v45 = vsel %vm595_vm5, %v684_v41, %v690_v39 }
 0x27d   : > { %v675_v42 = vpop.permute.xlu1 %674 }
 0x27e   : > { %v685_v43 = vperm.slane %v675_v42, %v1629_v24 }
 0x280   : > { %v692_v46 = vsel %vm597_vm6, %v685_v43, %v691_v45 }
 0x281   : > { %v693_v47 = vsel %vm599_vm7, %v686_v44, %v692_v46 }
 0x282   : > { %v695_v48 = vsel %vm602_vm8, %v693_v47, 0.0 }
 0x283   : > { %696 = vadd.xlane.f32.xlu2 %v695_v48 }
 0x2f6   : > { %v697_v49 = vpop.xlane.xlu2 %696 }
 0x2f7   : > { %1172 = vrcp.f32 %v697_v49 }
 0x2fd   : > { %v1173_v50 = vpop.eup %1172 }
 0x2fe   : > { %v701_v51 = vperm.slane %v1173_v50, 1  ;;  %v700_v52 = vperm.slane %v1173_v50, 0  ;;  %v703_v55 = vperm.slane %v1173_v50, 3  ;;  %v702_v56 = vperm.slane %v1173_v50, 2 }
 0x2ff   : > { %v705_v59 = vperm.slane %v1173_v50, 5  ;;  %v704_v60 = vperm.slane %v1173_v50, 4  ;;  %v707_v63 = vperm.slane %v1173_v50, 7  ;;  %v706_v0 = vperm.slane %v1173_v50, 6 }
 0x300   : > { %v717_v53 = vmul.f32 %v1159_v5, %v701_v51  ;;  %v716_v54 = vmul.f32 %v1161_v6, %v700_v52  ;;  %v719_v57 = vmul.f32 %v1163_v19, %v703_v55  ;;  %v718_v58 = vmul.f32 %v1647_v3, %v702_v56 }
 0x301   : > { %v721_v61 = vmul.f32 %v1169_v22, %v705_v59  ;;  %v720_v62 = vmul.f32 %v1165_v20, %v704_v60  ;;  %v723_v1 = vmul.f32 %v1167_v21, %v707_v63  ;;  %v722_v2 = vmul.f32 %v1171_v23, %v706_v0 }
 0x302   : > { %731 = vperm.xlu0 %1135, %v717_v53   ;;  %726 = vperm.xlu1 %1136, %v716_v54  }
 0x30a   : > { %741 = vperm.xlu0 %1135, %v719_v57   ;;  %736 = vperm.xlu1 %1136, %v718_v58  }
 0x312   : > { %751 = vperm.xlu0 %1135, %v721_v61   ;;  %746 = vperm.xlu1 %1136, %v720_v62  }
 0x31a   : > { %761 = vperm.xlu0 %1135, %v723_v1   ;;  %756 = vperm.xlu1 %1136, %v722_v2  }
 0x374   : > { %v732_v4 = vpop.permute.xlu0 %731  ;;  %v727_v5 = vpop.permute.xlu1 %726 }
 0x375   : > { %v765_v6 = vmul.f32 %v732_v4, %v1599_v14  ;;  %v764_v3 = vmul.f32 %v727_v5, %v1583_v11  ;;  %v846_v11 = vperm.slane %v732_v4, %v1629_v24  ;;  %v845_v27 = vperm.slane %v727_v5, %v1629_v24 }
 0x377   : > { %v779_v7 = vsel %vm399_vm0, %v765_v6, 0.0  ;;  %v772_v10 = vsel %vm399_vm0, %v764_v3, 0.0 }
 0x378   : > { %v780_v17 = vrot.slane %v779_v7, 4  ;;  %v773_v18 = vrot.slane %v772_v10, 4 }
 0x37a   : > { %v781_v22 = vadd.f32 %v780_v17, %v779_v7  ;;  %v774_v25 = vadd.f32 %v773_v18, %v772_v10 }
 0x37c   : > { %v742_v19 = vpop.permute.xlu0 %741  ;;  %v737_v20 = vpop.permute.xlu1 %736  ;;  %v782_v30 = vrot.slane %v781_v22, 2  ;;  %v775_v31 = vrot.slane %v774_v25, 2 }
 0x37d   : > { %v767_v21 = vmul.f32 %v742_v19, %v1591_v12  ;;  %v766_v23 = vmul.f32 %v737_v20, %v1575_v8  ;;  %v847_v34 = vperm.slane %v737_v20, %v1629_v24  ;;  %v853_v12 = vsel %vm587_vm1, %v846_v11, %v845_v27 }
 0x37e   : > { %v848_v8 = vperm.slane %v742_v19, %v1629_v24  ;;  %v783_v38 = vadd.f32 %v782_v30, %v781_v22  ;;  %v776_v39 = vadd.f32 %v775_v31, %v774_v25 }
 0x37f   : > { %v793_v26 = vsel %vm399_vm0, %v767_v21, 0.0  ;;  %v786_v14 = vsel %vm399_vm0, %v766_v23, 0.0  ;;  %v854_v43 = vsel %vm589_vm2, %v847_v34, %v853_v12 }
 0x380   : > { %v794_v28 = vrot.slane %v793_v26, 4  ;;  %v787_v29 = vrot.slane %v786_v14, 4  ;;  %v784_v50 = vrot.slane %v783_v38, 1  ;;  %v777_v51 = vrot.slane %v776_v39, 1 }
 0x382   : > { %v795_v32 = vadd.f32 %v794_v28, %v793_v26  ;;  %v788_v33 = vadd.f32 %v787_v29, %v786_v14  ;;  %v785_v61 = vadd.f32 %v784_v50, %v783_v38  ;;  %v778_v62 = vadd.f32 %v777_v51, %v776_v39 }
 0x384   : > { %v789_v35 = vrot.slane %v788_v33, 2  ;;  %v752_v36 = vpop.permute.xlu0 %751  ;;  %v747_v37 = vpop.permute.xlu1 %746  ;;  %v796_v42 = vrot.slane %v795_v32, 2  ;;  %v836_v25 = vsel %vm587_vm1, %v785_v61, %v778_v62 }
 0x385   : > { %v769_v40 = vmul.f32 %v752_v36, %v1578_v9  ;;  %v768_v41 = vmul.f32 %v747_v37, %v1606_v15  ;;  %v849_v46 = vperm.slane %v747_v37, %v1629_v24  ;;  %v855_v9 = vsel %vm591_vm3, %v848_v8, %v854_v43 }
 0x386   : > { %v790_v47 = vadd.f32 %v789_v35, %v788_v33  ;;  %v797_v15 = vadd.f32 %v796_v42, %v795_v32  ;;  %v850_v53 = vperm.slane %v752_v36, %v1629_v24 }
 0x387   : > { %v807_v44 = vsel %vm399_vm0, %v769_v40, 0.0  ;;  %v800_v45 = vsel %vm399_vm0, %v768_v41, 0.0  ;;  %v856_v55 = vsel %vm593_vm4, %v849_v46, %v855_v9 }
 0x388   : > { %v808_v48 = vrot.slane %v807_v44, 4  ;;  %v801_v49 = vrot.slane %v800_v45, 4  ;;  %v791_v56 = vrot.slane %v790_v47, 1  ;;  %v798_v1 = vrot.slane %v797_v15, 1 }
 0x389   : > { %v857_v4 = vsel %vm595_vm5, %v850_v53, %v856_v55 }
 0x38a   : > { %v809_v52 = vadd.f32 %v808_v48, %v807_v44  ;;  %v802_v54 = vadd.f32 %v801_v49, %v800_v45  ;;  %v792_v17 = vadd.f32 %v791_v56, %v790_v47  ;;  %v799_v21 = vadd.f32 %v798_v1, %v797_v15 }
 0x38c   : > { %v810_v57 = vrot.slane %v809_v52, 2  ;;  %v803_v58 = vrot.slane %v802_v54, 2  ;;  %v762_v59 = vpop.permute.xlu0 %761  ;;  %v757_v60 = vpop.permute.xlu1 %756  ;;  %v837_v26 = vsel %vm589_vm2, %v792_v17, %v836_v25 }
 0x38d   : > { %v771_v63 = vmul.f32 %v762_v59, %v1609_v16  ;;  %v770_v0 = vmul.f32 %v757_v60, %v1594_v13  ;;  %v851_v5 = vperm.slane %v757_v60, %v1629_v24  ;;  %v852_v7 = vperm.slane %v762_v59, %v1629_v24 }
 0x38e   : > { %v804_v2 = vadd.f32 %v803_v58, %v802_v54  ;;  %v811_v6 = vadd.f32 %v810_v57, %v809_v52  ;;  %v838_v31 = vsel %vm591_vm3, %v799_v21, %v837_v26 }
 0x38f   : > { %v821_v3 = vsel %vm399_vm0, %v771_v63, 0.0  ;;  %v814_v10 = vsel %vm399_vm0, %v770_v0, 0.0  ;;  %v858_v13 = vsel %vm597_vm6, %v851_v5, %v857_v4 }
 0x390   : > { %v805_v18 = vrot.slane %v804_v2, 1  ;;  %v822_v16 = vrot.slane %v821_v3, 4  ;;  %v815_v19 = vrot.slane %v814_v10, 4  ;;  %v812_v23 = vrot.slane %v811_v6, 1 }
 0x391   : > { %v859_v24 = vsel %vm599_vm7, %v852_v7, %v858_v13 }
 0x392   : > { %v823_v20 = vadd.f32 %v822_v16, %v821_v3  ;;  %v816_v22 = vadd.f32 %v815_v19, %v814_v10  ;;  %v806_v14 = vadd.f32 %v805_v18, %v804_v2  ;;  %861 = vst.msk [vmem:[%s382_s21] sm:$0xff] %vm602_vm8, %v859_v24  ;;  %v813_v30 = vadd.f32 %v812_v23, %v811_v6 }
 0x394   : > { %v824_v11 = vrot.slane %v823_v20, 2  ;;  %v817_v27 = vrot.slane %v816_v22, 2  ;;  %v839_v32 = vsel %vm593_vm4, %v806_v14, %v838_v31 }
 0x395   : > { %v840_v35 = vsel %vm595_vm5, %v813_v30, %v839_v32 }
 0x396   : > { %v825_v28 = vadd.f32 %v824_v11, %v823_v20  ;;  %v818_v29 = vadd.f32 %v817_v27, %v816_v22 }
 0x398   : > { %v826_v33 = vrot.slane %v825_v28, 1  ;;  %v819_v34 = vrot.slane %v818_v29, 1 }
 0x39a   : > { %v827_v12 = vadd.f32 %v826_v33, %v825_v28  ;;  %v820_v8 = vadd.f32 %v819_v34, %v818_v29 }
 0x39c   : > { %v841_v36 = vsel %vm597_vm6, %v820_v8, %v840_v35 }
 0x39d   : > { %v842_v37 = vsel %vm599_vm7, %v827_v12, %v841_v36 }
 0x39e   : > { %844 = vst.msk [vmem:[%s371_s28] sm:$0xff] %vm399_vm0, %v842_v37 }
 0x39f   : > { %1321 = shalt.err (!%p1318_p12)
}
 0x3a0   : > { %1072 = dma.vmem_to_hbm [thread:$0]  (%p1491_p3), %s880_s19, 128, %s882_s11, %s863_s12  }
 0x3a1 PF: > { %s896_s10 = sand.u32 1, %s1360_s24   ;;  %p1779_p13 = scmp.ge.s32.totalorder %s1372_s27, 2 }
 0x3a2   : > { %s897_s15 = scalar_lea.sflag [#allocation4], %s896_s10 }
 0x3a3   : > { %p1089_p0 = pnand %p1779_p13, %p1454_p6 }
 0x3a5   : > { %p1090_p5 = pneg %p1089_p0 }
 0x3a7   : > { %1355 = dma.done.wait (%p1090_p5), %s897_s15, 128  }
 0x3a8   : > { %1357 = vsyncadd (%p1090_p5), %s897_s15, 4294967168  ;;  %s1780_s27 = sld [smem:[#allocation18_spill]]  ;;  %s1783_s24 = smov %s1364_s25 }
 0x3a9   : > { %s1781_s17 = sld [smem:[#allocation16_spill]] }
 0x3aa   : > { %s1782_s26 = sld [smem:[#allocation19_spill]] }
 0x3ae   : > { %p25_p7 = scmp.ge.s32.totalorder %s1780_s27, 4  }
 0x3af   : > { %s1784_s25 = smov %s1781_s17 }
 0x3b0   :  { %27 = sbr.rel (!%p25_p7) target bundleno = 11 (0xb), region = 122 }
 0x3b5   :  { %910 = vsyncpa [#allocation3], 1 }
 0x3b6   :  { %912 = vsyncpa [#allocation3 + $0x1], 1 }
 0x3b7   :  { %913 = vsyncpa [#allocation6], 1 }
 0x3b8   :  { %915 = vsyncpa [#allocation6 + $0x1], 1 }
 0x3b9   :  { %916 = vsyncpa [#allocation9], 1 }
 0x3ba   :  { %917 = vsyncpa [#allocation4], 1 }
 0x3bb   :  { %919 = vsyncpa [#allocation4 + $0x1], 1 }

</bundles_post_ra>
